<compile_context>
chip_gen: v7x
topology: tpu7x:2x2x1
jax: 0.10.0
libtpu: 0.0.40
codegen_flags: <defaults>
</compile_context>

<pallas_src>
import functools

import jax
import jax.numpy as jnp
from jax.experimental import pallas as pl
from jax.experimental.pallas import tpu as pltpu

R_REAL = 0.9
R_FAKE = 0.5
ALPHA = 20.0
EPS = 1e-12       # matches F.normalize eps
LANE = 128        # TPU lane width
ROW_ALIGN = 32    # row-tile alignment (covers int8 sublane packing: (32,128))


def _cdiv(a, b):
    return -(-a // b)


def _round_up(a, b):
    return _cdiv(a, b) * b


def _ocsoftmax_kernel(x_ref, w_ref, lab_ref, partial_ref, neg_ref, *,
                      r_real, r_fake, alpha, batch, tile_rows):
    # x_ref:       (D, TR, 128)  f32, batch packed sublane+lane dense
    # w_ref:       (D, 1, 128)   f32, pre-normalized center, lane-replicated
    # lab_ref:     (TR, 128)     int8 labels
    # partial_ref: (1, 128)      per-tile partial softplus sum (lane-broadcast)
    # neg_ref:     (TR, 128)     -scores for this tile
    x = x_ref[...].astype(jnp.float32)          # f32 compute even for bf16 storage
    w = w_ref[...]                              # (D, 1, 128)
    labels = lab_ref[...].astype(jnp.int32)     # (TR, 128)

    # 1 / max(||x||, eps)  ==  rsqrt(max(||x||^2, eps^2)); D-reduction is just
    # a couple of VPU adds over the tiny leading axis.
    normsq = jnp.sum(x * x, axis=0)                               # (TR, 128)
    inv_norm = jax.lax.rsqrt(jnp.maximum(normsq, EPS * EPS))
    scores = jnp.sum(x * w, axis=0) * inv_norm                    # (TR, 128)

    # Label-conditional margin adjustment (label==0 / label==1 / otherwise).
    mod = jnp.where(labels == 0, r_real - scores,
                    jnp.where(labels == 1, scores - r_fake, scores))

    # Numerically stable softplus(alpha * mod).
    z = alpha * mod
    sp = jnp.maximum(z, 0.0) + jnp.log1p(jnp.exp(-jnp.abs(z)))

    # Mask padded samples (>= batch) out of the loss sum.
    row = jax.lax.broadcasted_iota(jnp.int32, (tile_rows, LANE), 0)
    lane = jax.lax.broadcasted_iota(jnp.int32, (tile_rows, LANE), 1)
    sample = (pl.program_id(0) * tile_rows + row) * LANE + lane
    tile_sum = jnp.sum(jnp.where(sample < batch, sp, 0.0))

    partial_ref[...] = jnp.broadcast_to(tile_sum, (1, LANE)).astype(jnp.float32)
    neg_ref[...] = (-scores).astype(neg_ref.dtype)


@functools.partial(jax.jit,
                   static_argnames=("r_real", "r_fake", "alpha", "max_tile_rows"))
def ocsoftmax_forward(x, center, labels, *, r_real=R_REAL, r_fake=R_FAKE,
                      alpha=ALPHA, max_tile_rows=512):
    """x: (B, D) float32 (bf16 storage also OK), center: (1, D), labels: (B,)."""
    B, D = x.shape

    # Row tiling of the (rows, 128)-packed batch axis.
    rows = _cdiv(B, LANE)
    tile_rows = min(max_tile_rows, rows)
    if rows >= 4 * ROW_ALIGN:
        # Enough work: keep >= 4 grid steps so v7x megacore can shard them.
        tile_rows = min(tile_rows, _cdiv(rows, 4))
    tile_rows = _round_up(tile_rows, ROW_ALIGN)
    num_tiles = _cdiv(rows, tile_rows)
    rows_pad = num_tiles * tile_rows
    b_pad = rows_pad * LANE

    # Precompute w = center / max(||center||, eps) once (a D-vector constant),
    # lane-replicated so the kernel only does a broadcast-multiply.
    c = center.astype(jnp.float32).reshape(D)
    w = c / jnp.maximum(jnp.sqrt(jnp.sum(c * c)), EPS)
    w_rep = jnp.broadcast_to(w.reshape(D, 1, 1), (D, 1, LANE))

    # Layout plumbing: batch packed (rows, 128) sublane+lane dense; labels int8.
    # Under jit the pad + transpose of x fuse into a single copy pass.
    x_pad = jnp.pad(x.astype(jnp.float32), ((0, b_pad - B), (0, 0)))     # (b_pad, D)
    x_r = jnp.transpose(x_pad.reshape(rows_pad, LANE, D), (2, 0, 1))     # (D, rows_pad, 128)
    lab = jnp.pad(labels.astype(jnp.int8), (0, b_pad - B)).reshape(rows_pad, LANE)

    kernel = functools.partial(
        _ocsoftmax_kernel, r_real=float(r_real), r_fake=float(r_fake),
        alpha=float(alpha), batch=B, tile_rows=tile_rows)

    partials, neg = pl.pallas_call(
        kernel,
        grid=(num_tiles,),
        in_specs=[
            pl.BlockSpec((D, tile_rows, LANE), lambda i: (0, i, 0)),   # x
            pl.BlockSpec((D, 1, LANE), lambda i: (0, 0, 0)),           # w (constant)
            pl.BlockSpec((tile_rows, LANE), lambda i: (i, 0)),         # labels (int8)
        ],
        out_specs=(
            pl.BlockSpec((1, LANE), lambda i: (0, i)),                 # per-tile loss sums
            pl.BlockSpec((tile_rows, LANE), lambda i: (i, 0)),         # -scores
        ),
        out_shape=(
            jax.ShapeDtypeStruct((1, num_tiles * LANE), jnp.float32),
            jax.ShapeDtypeStruct((rows_pad, LANE), jnp.float32),
        ),
        compiler_params=pltpu.CompilerParams(
            dimension_semantics=("parallel",),        # no cross-step state -> megacore OK
            vmem_limit_bytes=32 * 1024 * 1024,        # fits v7x's 64 MiB; lifts v5e's 16 MiB default
        ),
    )(x_r, w_rep, lab)

    # Finish the mean: each tile broadcast its partial sum to 128 lanes; take
    # lane 0 per tile, sum, divide by the true B.
    loss = jnp.sum(partials.reshape(num_tiles, LANE)[:, 0]) / B
    neg_scores = neg.reshape(-1)[:B]                 # free row-major reshape + slice
    return loss, neg_scores


def _reference(x, center, labels, *, r_real=R_REAL, r_fake=R_FAKE, alpha=ALPHA):
    w = center / jnp.maximum(jnp.linalg.norm(center, axis=1, keepdims=True), EPS)
    xn = x / jnp.maximum(jnp.linalg.norm(x, axis=1, keepdims=True), EPS)
    scores = xn @ w.T
    mod = jnp.where(labels[:, None] == 0, r_real - scores,
                    jnp.where(labels[:, None] == 1, scores - r_fake, scores))
    loss = jnp.mean(jax.nn.softplus(alpha * mod))
    return loss, -scores[:, 0]


if __name__ == "__main__":
    feat_dim = 2
    batch = 8

    key = jax.random.PRNGKey(0)
    kx, kc, kl = jax.random.split(key, 3)

    x = jax.random.normal(kx, (batch, feat_dim), dtype=jnp.float32)
    # Deterministic parameter init standing in for kaiming_uniform_ on (1, D).
    center = jax.random.normal(kc, (1, feat_dim), dtype=jnp.float32)
    labels = jax.random.bernoulli(kl, 0.5, (batch,)).astype(jnp.int32)

    loss, neg_scores = ocsoftmax_forward(x, center, labels)
    jax.block_until_ready((loss, neg_scores))

    ref_loss, ref_neg = _reference(x, center, labels)
    assert jnp.allclose(loss, ref_loss, atol=1e-5), (loss, ref_loss)
    assert jnp.allclose(neg_scores, ref_neg, atol=1e-5)

    # Padding-mask path: B not a multiple of 128.
    batch2 = 200
    kx2, kl2 = jax.random.split(kl)
    x2 = jax.random.normal(kx2, (batch2, feat_dim), dtype=jnp.float32)
    labels2 = jax.random.bernoulli(kl2, 0.5, (batch2,)).astype(jnp.int32)
    loss2, neg2 = ocsoftmax_forward(x2, center, labels2)
    jax.block_until_ready((loss2, neg2))
    ref_loss2, ref_neg2 = _reference(x2, center, labels2)
    assert jnp.allclose(loss2, ref_loss2, atol=1e-5), (loss2, ref_loss2)
    assert jnp.allclose(neg2, ref_neg2, atol=1e-5)

    # Multi-tile path: 33 packed rows with a 32-row tile cap -> 2 grid steps.
    batch3 = 33 * LANE
    kx3, kl3 = jax.random.split(kl2)
    x3 = jax.random.normal(kx3, (batch3, feat_dim), dtype=jnp.float32)
    labels3 = jax.random.bernoulli(kl3, 0.5, (batch3,)).astype(jnp.int32)
    loss3, neg3 = ocsoftmax_forward(x3, center, labels3, max_tile_rows=32)
    jax.block_until_ready((loss3, neg3))
    ref_loss3, ref_neg3 = _reference(x3, center, labels3)
    assert jnp.allclose(loss3, ref_loss3, atol=1e-5), (loss3, ref_loss3)
    assert jnp.allclose(neg3, ref_neg3, atol=1e-5)

    print("KERNEL_OK")
</pallas_src>

<mosaic_0001>
module attributes {stable_mosaic.version = 11 : i64} {
  func.func @_ocsoftmax_kernel(%arg0: i32, %arg1: memref<2x32x128xf32, #tpu.memory_space<vmem>>, %arg2: memref<2x1x128xf32, #tpu.memory_space<vmem>>, %arg3: memref<32x128xi8, #tpu.memory_space<vmem>>, %arg4: memref<1x128xf32, #tpu.memory_space<vmem>>, %arg5: memref<32x128xf32, #tpu.memory_space<vmem>>) attributes {dimension_semantics = [#tpu.dimension_semantics<parallel>], iteration_bounds = array<i64: 1>, scalar_prefetch = 0 : i64, scratch_operands = 0 : i64, tpu.core_type = #tpu.core_type<tc>, window_params = [{transform_indices = @transform_0, window_bounds = array<i64: 2, 32, 128>}, {pipeline_mode = #tpu.pipeline_mode<synchronous>, transform_indices = @transform_1, window_bounds = array<i64: 2, 1, 128>}, {transform_indices = @transform_2, window_bounds = array<i64: 32, 128>}, {transform_indices = @transform_3, window_bounds = array<i64: 1, 128>}, {transform_indices = @transform_4, window_bounds = array<i64: 32, 128>}]} {
    %c0 = arith.constant 0 : index
    %c0_0 = arith.constant 0 : index
    %c0_1 = arith.constant 0 : index
    %0 = vector.load %arg1[%c0, %c0_0, %c0_1] : memref<2x32x128xf32, #tpu.memory_space<vmem>>, vector<2x32x128xf32>
    %c0_2 = arith.constant 0 : index
    %c0_3 = arith.constant 0 : index
    %c0_4 = arith.constant 0 : index
    %1 = vector.load %arg2[%c0_2, %c0_3, %c0_4] : memref<2x1x128xf32, #tpu.memory_space<vmem>>, vector<2x1x128xf32>
    %c0_5 = arith.constant 0 : index
    %c0_6 = arith.constant 0 : index
    %2 = vector.load %arg3[%c0_5, %c0_6] : memref<32x128xi8, #tpu.memory_space<vmem>>, vector<32x128xi8>
    %3 = arith.extsi %2 : vector<32x128xi8> to vector<32x128xi32>
    %4 = arith.mulf %0, %0 : vector<2x32x128xf32>
    %cst = arith.constant dense<0.000000e+00> : vector<32x128xf32>
    %5 = vector.multi_reduction <add>, %4, %cst [0] : vector<2x32x128xf32> to vector<32x128xf32>
    %cst_7 = arith.constant 1.000000e-24 : f32
    %6 = vector.broadcast %cst_7 : f32 to vector<32x128xf32>
    %7 = arith.maximumf %5, %6 : vector<32x128xf32>
    %8 = math.rsqrt %7 : vector<32x128xf32>
    %9 = vector.broadcast %1 : vector<2x1x128xf32> to vector<2x32x128xf32>
    %10 = arith.mulf %0, %9 : vector<2x32x128xf32>
    %cst_8 = arith.constant dense<0.000000e+00> : vector<32x128xf32>
    %11 = vector.multi_reduction <add>, %10, %cst_8 [0] : vector<2x32x128xf32> to vector<32x128xf32>
    %12 = arith.mulf %11, %8 : vector<32x128xf32>
    %c0_i32 = arith.constant 0 : i32
    %13 = vector.broadcast %c0_i32 : i32 to vector<32x128xi32>
    %14 = arith.cmpi eq, %3, %13 : vector<32x128xi32>
    %cst_9 = arith.constant 0.899999976 : f32
    %15 = vector.broadcast %cst_9 : f32 to vector<32x128xf32>
    %16 = arith.subf %15, %12 : vector<32x128xf32>
    %c1_i32 = arith.constant 1 : i32
    %17 = vector.broadcast %c1_i32 : i32 to vector<32x128xi32>
    %18 = arith.cmpi eq, %3, %17 : vector<32x128xi32>
    %cst_10 = arith.constant 5.000000e-01 : f32
    %19 = vector.broadcast %cst_10 : f32 to vector<32x128xf32>
    %20 = arith.subf %12, %19 : vector<32x128xf32>
    %21 = arith.select %18, %20, %12 : vector<32x128xi1>, vector<32x128xf32>
    %22 = arith.select %14, %16, %21 : vector<32x128xi1>, vector<32x128xf32>
    %cst_11 = arith.constant 2.000000e+01 : f32
    %23 = vector.broadcast %cst_11 : f32 to vector<32x128xf32>
    %24 = arith.mulf %23, %22 : vector<32x128xf32>
    %cst_12 = arith.constant 0.000000e+00 : f32
    %25 = vector.broadcast %cst_12 : f32 to vector<32x128xf32>
    %26 = arith.maximumf %24, %25 : vector<32x128xf32>
    %27 = math.absf %24 : vector<32x128xf32>
    %cst_13 = arith.constant 0.000000e+00 : f32
    %28 = vector.broadcast %cst_13 : f32 to vector<32x128xf32>
    %29 = arith.subf %28, %27 : vector<32x128xf32>
    %30 = math.exp %29 : vector<32x128xf32>
    %31 = math.log1p %30 : vector<32x128xf32>
    %32 = arith.addf %26, %31 : vector<32x128xf32>
    %33 = tpu.iota {dimensions = array<i32: 0>} : vector<32x128xi32>
    %34 = tpu.iota {dimensions = array<i32: 1>} : vector<32x128xi32>
    %c32_i32 = arith.constant 32 : i32
    %35 = arith.muli %arg0, %c32_i32 : i32
    %36 = vector.broadcast %35 : i32 to vector<32x128xi32>
    %37 = arith.addi %36, %33 : vector<32x128xi32>
    %c128_i32 = arith.constant 128 : i32
    %38 = vector.broadcast %c128_i32 : i32 to vector<32x128xi32>
    %39 = arith.muli %37, %38 : vector<32x128xi32>
    %40 = arith.addi %39, %34 : vector<32x128xi32>
    %c8_i32 = arith.constant 8 : i32
    %41 = vector.broadcast %c8_i32 : i32 to vector<32x128xi32>
    %42 = arith.cmpi slt, %40, %41 : vector<32x128xi32>
    %cst_14 = arith.constant 0.000000e+00 : f32
    %43 = vector.broadcast %cst_14 : f32 to vector<32x128xf32>
    %44 = arith.select %42, %32, %43 : vector<32x128xi1>, vector<32x128xf32>
    %45 = vector.shape_cast %44 : vector<32x128xf32> to vector<1x32x128xf32>
    %cst_15 = arith.constant dense<0.000000e+00> : vector<1xf32>
    %46 = vector.multi_reduction <add>, %45, %cst_15 [1, 2] : vector<1x32x128xf32> to vector<1xf32>
    %47 = vector.shape_cast %46 : vector<1xf32> to vector<1x1x1xf32>
    %48 = vector.extract %47[0, 0, 0] : f32 from vector<1x1x1xf32>
    %49 = vector.broadcast %48 : f32 to vector<1x128xf32>
    %c0_16 = arith.constant 0 : index
    %c0_17 = arith.constant 0 : index
    %50 = vector.load %arg4[%c0_16, %c0_17] : memref<1x128xf32, #tpu.memory_space<vmem>>, vector<1x128xf32>
    tpu.vector_store %arg4[%c0_16, %c0_17], %49 {strides = array<i32>} : memref<1x128xf32, #tpu.memory_space<vmem>>, vector<1x128xf32>,
    %cst_18 = arith.constant 0.000000e+00 : f32
    %51 = vector.broadcast %cst_18 : f32 to vector<32x128xf32>
    %52 = arith.subf %51, %12 : vector<32x128xf32>
    %c0_19 = arith.constant 0 : index
    %c0_20 = arith.constant 0 : index
    %53 = vector.load %arg5[%c0_19, %c0_20] : memref<32x128xf32, #tpu.memory_space<vmem>>, vector<32x128xf32>
    tpu.vector_store %arg5[%c0_19, %c0_20], %52 {strides = array<i32>} : memref<32x128xf32, #tpu.memory_space<vmem>>, vector<32x128xf32>,
    return
  }
  func.func @transform_0(%arg0: i32) -> (i32, i32, i32) {
    %c0_i32 = arith.constant 0 : i32
    %c0_i32_0 = arith.constant 0 : i32
    %c0_i32_1 = arith.constant 0 : i32
    return %c0_i32, %arg0, %c0_i32_0 : i32, i32, i32
  }
  func.func @transform_1(%arg0: i32) -> (i32, i32, i32) {
    %c0_i32 = arith.constant 0 : i32
    %c0_i32_0 = arith.constant 0 : i32
    %c0_i32_1 = arith.constant 0 : i32
    %c0_i32_2 = arith.constant 0 : i32
    return %c0_i32, %c0_i32_0, %c0_i32_1 : i32, i32, i32
  }
  func.func @transform_2(%arg0: i32) -> (i32, i32) {
    %c0_i32 = arith.constant 0 : i32
    %c0_i32_0 = arith.constant 0 : i32
    return %arg0, %c0_i32 : i32, i32
  }
  func.func @transform_3(%arg0: i32) -> (i32, i32) {
    %c0_i32 = arith.constant 0 : i32
    %c0_i32_0 = arith.constant 0 : i32
    return %c0_i32, %arg0 : i32, i32
  }
  func.func @transform_4(%arg0: i32) -> (i32, i32) {
    %c0_i32 = arith.constant 0 : i32
    %c0_i32_0 = arith.constant 0 : i32
    return %arg0, %c0_i32 : i32, i32
  }
}

</mosaic_0001>

<bundles_post_ra>
// kernel: ocsoftmax_forward.1
= control target key start
LH: loop header
LB: loop body
LE: loop exit
PB: predicated region body
PF: predicated region fallthrough
CT: control target
= control target key end

     0   :  { %s407_s0 = inlined_call_operand.vmem [shape: f32[2,32,128], index: 0, kind: input, shape index: {}]   ;;  %s408_s1 = inlined_call_operand.vmem [shape: f32[2,1,128], index: 1, kind: input, shape index: {}]   ;;  %s409_s2 = inlined_call_operand.vmem [shape: s8[32,128], index: 2, kind: input, shape index: {}]   ;;  %s410_s4 = inlined_call_operand.vmem [shape: f32[32,128], index: 4, kind: output, shape index: {1}]   ;;  %s411_s3 = inlined_call_operand.vmem [shape: f32[1,128], index: 3, kind: output, shape index: {0}]  }
   0x1   :  { %v16_v0 = vld [vmem:[%s407_s0] sm:$0xff]  ;;  %v17_v1 = vld [vmem:[%s407_s0 + $0x8] sm:$0xff]  ;;  %v18_v2 = vld [vmem:[%s407_s0 + $0x10] sm:$0xff] }
   0x2   :  { %v19_v3 = vld [vmem:[%s407_s0 + $0x18] sm:$0xff]  ;;  %v20_v4 = vld [vmem:[%s407_s0 + $0x20] sm:$0xff]  ;;  %v21_v5 = vld [vmem:[%s407_s0 + $0x28] sm:$0xff]  ;;  %v31_v6 = vmul.f32 %v16_v0, %v16_v0  ;;  %v32_v7 = vmul.f32 %v17_v1, %v17_v1  ;;  %v33_v8 = vmul.f32 %v18_v2, %v18_v2 }
   0x3   :  { %v22_v9 = vld [vmem:[%s407_s0 + $0x30] sm:$0xff]  ;;  %v23_v10 = vld [vmem:[%s407_s0 + $0x38] sm:$0xff]  ;;  %v34_v11 = vmul.f32 %v19_v3, %v19_v3  ;;  %v35_v12 = vmul.f32 %v20_v4, %v20_v4  ;;  %v36_v13 = vmul.f32 %v21_v5, %v21_v5  ;;  %v226_v24 = vld [vmem:[%s408_s1] ss:$0 sm:$0xff] }
   0x4   :  { %v37_v14 = vmul.f32 %v22_v9, %v22_v9  ;;  %v38_v15 = vmul.f32 %v23_v10, %v23_v10  ;;  %v227_v25 = vld [vmem:[%s408_s1 + $0x1] ss:$0 sm:$0xff]  ;;  %v63_v27 = vmul.f32 %v226_v24, %v16_v0  ;;  %v64_v29 = vmul.f32 %v226_v24, %v17_v1 }
   0x5   :  { %v39_v16 = vadd.f32 %v35_v12, %v31_v6  ;;  %v40_v17 = vadd.f32 %v36_v13, %v32_v7  ;;  %v26_v26 = vld [vmem:[%s409_s2] sm:$0xff]  ;;  %v67_v28 = vmul.f32 %v227_v25, %v20_v4  ;;  %v68_v30 = vmul.f32 %v227_v25, %v21_v5 }
   0x6   :  { %v41_v18 = vadd.f32 %v37_v14, %v33_v8  ;;  %v42_v19 = vadd.f32 %v38_v15, %v34_v11  ;;  %v65_v31 = vmul.f32 %v226_v24, %v18_v2  ;;  %v69_v32 = vmul.f32 %v227_v25, %v22_v9 }
   0x7   :  { %v43_v20 = vmax.f32 %v39_v16, 1e-24  ;;  %v44_v21 = vmax.f32 %v40_v17, 1e-24  ;;  %v27_v33 = vunpack.c.0.s8 %v26_v26  ;;  %v28_v34 = vunpack.c.1.s8 %v26_v26 }
   0x8   :  { %v45_v22 = vmax.f32 %v41_v18, 1e-24  ;;  %v46_v23 = vmax.f32 %v42_v19, 1e-24  ;;  %v66_v35 = vmul.f32 %v226_v24, %v19_v3  ;;  %v70_v36 = vmul.f32 %v227_v25, %v23_v10 }
   0x9   :  { %234 = vrsqrt.f32 %v43_v20  ;;  %v29_v37 = vunpack.c.2.s8 %v26_v26  ;;  %v30_v38 = vunpack.c.3.s8 %v26_v26  ;;  %v71_v39 = vadd.f32 %v67_v28, %v63_v27 }
   0xa   :  { %236 = vrsqrt.f32 %v44_v21  ;;  %v72_v40 = vadd.f32 %v68_v30, %v64_v29  ;;  %v73_v41 = vadd.f32 %v69_v32, %v65_v31  ;;  %v74_v43 = vadd.f32 %v70_v36, %v66_v35 }
   0xb   :  { %238 = vrsqrt.f32 %v45_v22  ;;  %vm316_vm0 = vcmp.eq.s32.totalorder %v27_v33, 0  ;;  %vm320_vm1 = vcmp.eq.s32.totalorder %v28_v34, 0  ;;  %vm324_vm2 = vcmp.eq.s32.totalorder %v29_v37, 0 }
   0xc   :  { %240 = vrsqrt.f32 %v46_v23  ;;  %vm328_vm3 = vcmp.eq.s32.totalorder %v30_v38, 0  ;;  %vm332_vm4 = vcmp.eq.s32.totalorder %v27_v33, 1  ;;  %vm336_vm5 = vcmp.eq.s32.totalorder %v28_v34, 1 }
   0xd   :  { %vm340_vm6 = vcmp.eq.s32.totalorder %v29_v37, 1  ;;  %vm344_vm7 = vcmp.eq.s32.totalorder %v30_v38, 1  ;;  %v167_v31 = vlaneseq }
   0xf   :  { %v168_v32 = vshrl.u32 %v167_v31, 7 }
  0x11   :  { %v180_v48 = vmul.u32 128, %v168_v32 }
  0x13   :  { %v235_v42 = vpop.eup %234 }
  0x14   :  { %v237_v46 = vpop.eup %236  ;;  %v75_v47 = vmul.f32 %v235_v42, %v71_v39  ;;  %v170_v42 = vadd.s32 16, %v168_v32 }
  0x15   :  { %v239_v51 = vpop.eup %238  ;;  %v76_v52 = vmul.f32 %v237_v46, %v72_v40  ;;  %v169_v40 = vadd.s32 8, %v168_v32 }
  0x16   :  { %v241_v56 = vpop.eup %240  ;;  %v77_v57 = vmul.f32 %v239_v51, %v73_v41  ;;  %v83_v58 = vsub.f32 0.9, %v75_v47  ;;  %v228_v59 = vadd.f32 -0.5, %v75_v47  ;;  %v210_v60 = vsub.f32 0.0, %v75_v47 }
  0x17   :  { %v78_v61 = vmul.f32 %v241_v56, %v74_v43  ;;  %v84_v62 = vsub.f32 0.9, %v76_v52  ;;  %v229_v63 = vadd.f32 -0.5, %v76_v52  ;;  %v211_v0 = vsub.f32 0.0, %v76_v52 }
  0x18   :  { %v85_v1 = vsub.f32 0.9, %v77_v57  ;;  %v230_v2 = vadd.f32 -0.5, %v77_v57  ;;  %v95_v3 = vsel %vm332_vm4, %v228_v59, %v75_v47  ;;  %v212_v4 = vsub.f32 0.0, %v77_v57  ;;  %214 = vst [vmem:[%s410_s4] sm:$0xff] %v210_v60 }
  0x19   :  { %v86_v5 = vsub.f32 0.9, %v78_v61  ;;  %v231_v6 = vadd.f32 -0.5, %v78_v61  ;;  %v96_v7 = vsel %vm336_vm5, %v229_v63, %v76_v52  ;;  %v99_v8 = vsel %vm316_vm0, %v83_v58, %v95_v3  ;;  %215 = vst [vmem:[%s410_s4 + $0x8] sm:$0xff] %v211_v0 }
  0x1a   :  { %v97_v9 = vsel %vm340_vm6, %v230_v2, %v77_v57  ;;  %v100_v10 = vsel %vm320_vm1, %v84_v62, %v96_v7  ;;  %v364_v11 = vmul.f32 20.0, %v99_v8  ;;  %v213_v12 = vsub.f32 0.0, %v78_v61  ;;  %216 = vst [vmem:[%s410_s4 + $0x10] sm:$0xff] %v212_v4 }
  0x1b   :  { %v98_v13 = vsel %vm344_vm7, %v231_v6, %v78_v61  ;;  %v101_v14 = vsel %vm324_vm2, %v85_v1, %v97_v9  ;;  %v373_v15 = vmul.f32 20.0, %v100_v10  ;;  %v171_v43 = vadd.s32 24, %v168_v32 }
  0x1c   :  { %v102_v16 = vsel %vm328_vm3, %v86_v5, %v98_v13  ;;  %v377_v17 = vmul.f32 20.0, %v101_v14  ;;  %v111_v18 = vand.u32 2147483647, %v364_v11  ;;  %217 = vst [vmem:[%s410_s4 + $0x18] sm:$0xff] %v213_v12  ;;  %v173_v47 = vand.u32 127, %v167_v31 }
  0x1d   :  { %v383_v19 = vmul.f32 20.0, %v102_v16  ;;  %v112_v20 = vand.u32 2147483647, %v373_v15  ;;  %v181_v49 = vmul.u32 128, %v169_v40  ;;  %v182_v52 = vmul.u32 128, %v170_v42 }
  0x1e   :  { %v113_v21 = vand.u32 2147483647, %v377_v17  ;;  %v115_v22 = vsub.f32 0.0, %v111_v18  ;;  %v183_v53 = vmul.u32 128, %v171_v43  ;;  %v184_v59 = vadd.s32 %v180_v48, %v173_v47 }
  0x1f   :  { %v114_v23 = vand.u32 2147483647, %v383_v19  ;;  %v116_v24 = vsub.f32 0.0, %v112_v20  ;;  %v185_v60 = vadd.s32 %v181_v49, %v173_v47  ;;  %v186_v63 = vadd.s32 %v182_v52, %v173_v47 }
  0x20   :  { %v117_v25 = vsub.f32 0.0, %v113_v21  ;;  %v119_v26 = vmul.f32 1.442695, %v115_v22  ;;  %v187_v0 = vadd.s32 %v183_v53, %v173_v47  ;;  %v107_v2 = vmax.f32 %v364_v11, 0.0 }
  0x21   :  { %v118_v27 = vsub.f32 0.0, %v114_v23  ;;  %v121_v28 = vmul.f32 1.442695, %v116_v24  ;;  %v108_v7 = vmax.f32 %v373_v15, 0.0  ;;  %v109_v13 = vmax.f32 %v377_v17, 0.0 }
  0x22   :  { %242 = vpow2.f32 %v119_v26  ;;  %v123_v29 = vmul.f32 1.442695, %v117_v25  ;;  %vm188_vm11 = vcmp.lt.s32.totalorder %v184_v59, 8  ;;  %vm189_vm12 = vcmp.lt.s32.totalorder %v185_v60, 8 }
  0x23   :  { %244 = vpow2.f32 %v121_v28  ;;  %v125_v30 = vmul.f32 1.442695, %v118_v27  ;;  %v110_v15 = vmax.f32 %v383_v19, 0.0  ;;  %vm190_vm14 = vcmp.lt.s32.totalorder %v186_v63, 8 }
  0x24   :  { %246 = vpow2.f32 %v123_v29  ;;  %vm191_vm15 = vcmp.lt.s32.totalorder %v187_v0, 8 }
  0x25   :  { %248 = vpow2.f32 %v125_v30 }
  0x2c   :  { %v243_v33 = vpop.eup %242 }
  0x2d   :  { %v245_v34 = vpop.eup %244  ;;  %v127_v35 = vadd.f32 1.0, %v243_v33  ;;  %v130_v41 = vmul.f32 -0.5, %v243_v33  ;;  %v133_v54 = vand.u32 2147483647, %v243_v33 }
  0x2e   :  { %v247_v36 = vpop.eup %246  ;;  %v136_v37 = vadd.f32 1.0, %v245_v34  ;;  %v139_v44 = vmul.f32 -0.5, %v245_v34  ;;  %v142_v56 = vand.u32 2147483647, %v245_v34 }
  0x2f   :  { %v249_v38 = vpop.eup %248  ;;  %250 = vlog2.f32 %v127_v35  ;;  %v145_v39 = vadd.f32 1.0, %v247_v36  ;;  %v148_v46 = vmul.f32 -0.5, %v247_v36  ;;  %v131_v50 = vadd.f32 1.0, %v130_v41 }
  0x30   :  { %252 = vlog2.f32 %v136_v37  ;;  %v154_v45 = vadd.f32 1.0, %v249_v38  ;;  %v157_v51 = vmul.f32 -0.5, %v249_v38  ;;  %v140_v55 = vadd.f32 1.0, %v139_v44 }
  0x31   :  { %254 = vlog2.f32 %v145_v39  ;;  %v149_v57 = vadd.f32 1.0, %v148_v46  ;;  %v151_v58 = vand.u32 2147483647, %v247_v36  ;;  %v132_v61 = vmul.f32 %v243_v33, %v131_v50 }
  0x32   :  { %256 = vlog2.f32 %v154_v45  ;;  %v158_v62 = vadd.f32 1.0, %v157_v51  ;;  %vm389_vm8 = vcmp.lt.f32.partialorder %v133_v54, 0.0004427343  ;;  %v141_v4 = vmul.f32 %v245_v34, %v140_v55 }
  0x33   :  { %v160_v5 = vand.u32 2147483647, %v249_v38  ;;  %vm394_vm9 = vcmp.lt.f32.partialorder %v142_v56, 0.0004427343  ;;  %v150_v10 = vmul.f32 %v247_v36, %v149_v57  ;;  %vm152_vm10 = vcmp.lt.f32.partialorder %v151_v58, 0.0004427343 }
  0x34   :  { %v159_v18 = vmul.f32 %v249_v38, %v158_v62 }
  0x35   :  { %vm161_vm13 = vcmp.lt.f32.partialorder %v160_v5, 0.0004427343 }
  0x39   :  { %v251_v1 = vpop.eup %250 }
  0x3a   :  { %v253_v6 = vpop.eup %252  ;;  %v129_v8 = vmul.f32 0.6931472, %v251_v1 }
  0x3b   :  { %v255_v12 = vpop.eup %254  ;;  %v138_v14 = vmul.f32 0.6931472, %v253_v6 }
  0x3c   :  { %v135_v11 = vsel %vm389_vm8, %v132_v61, %v129_v8  ;;  %v147_v16 = vmul.f32 0.6931472, %v255_v12  ;;  %v257_v20 = vpop.eup %256 }
  0x3d   :  { %v144_v21 = vsel %vm394_vm9, %v141_v4, %v138_v14  ;;  %v163_v22 = vadd.f32 %v135_v11, %v107_v2  ;;  %v156_v24 = vmul.f32 0.6931472, %v257_v20 }
  0x3e   :  { %v153_v23 = vsel %vm152_vm10, %v150_v10, %v147_v16  ;;  %v164_v17 = vadd.f32 %v144_v21, %v108_v7 }
  0x3f   :  { %v165_v25 = vadd.f32 %v153_v23, %v109_v13  ;;  %v192_v26 = vsel %vm188_vm11, %v163_v22, 0.0  ;;  %v162_v27 = vsel %vm161_vm13, %v159_v18, %v156_v24 }
  0x40   :  { %v193_v28 = vsel %vm189_vm12, %v164_v17, 0.0  ;;  %v166_v29 = vadd.f32 %v162_v27, %v110_v15 }
  0x41   :  { %v194_v30 = vsel %vm190_vm14, %v165_v25, 0.0  ;;  %v196_v31 = vadd.f32 %v193_v28, %v192_v26 }
  0x42   :  { %v195_v32 = vsel %vm191_vm15, %v166_v29, 0.0 }
  0x43   :  { %v197_v33 = vadd.f32 %v196_v31, %v194_v30 }
  0x45   :  { %v198_v19 = vadd.f32 %v197_v33, %v195_v32 }
  0x47   :  { %199 = vadd.xlane.f32.xlu0 %v198_v19 }
  0xd4   :  { %v200_v34 = vpop.xlane.xlu0 %199 }
  0xd5   :  { %v201_v35 = vrot.slane %v200_v34, 4 }
  0xd7   :  { %v202_v36 = vadd.f32 %v201_v35, %v200_v34 }
  0xd9   :  { %v203_v37 = vrot.slane %v202_v36, 2 }
  0xdb   :  { %v204_v38 = vadd.f32 %v203_v37, %v202_v36 }
  0xdd   :  { %v205_v39 = vrot.slane %v204_v38, 1 }
  0xdf   :  { %v206_v40 = vadd.f32 %v205_v39, %v204_v38 }
  0xe1   :  { %232 = vpush %v206_v40 }
 0x112   :  { %s233_s4 = spop %232 }
 0x113   :  { %v208_v41 = vstv %s233_s4 }
 0x114   :  { %209 = vst [vmem:[%s411_s3] sm:$0x1] %v208_v41 }

</bundles_post_ra>
